<compile_context>
chip_gen: v6e
topology: v6e:2x2x1
jax: 0.10.0
libtpu: 0.0.40
codegen_flags: <defaults>
</compile_context>

<pallas_src>
import functools

import jax
import jax.numpy as jnp
from jax.experimental import pallas as pl
from jax.experimental.pallas import tpu as pltpu


def _round_up(x, m):
    return ((x + m - 1) // m) * m


def _derive_vmem_limit_bytes():
    """Per-generation VMEM budget (v5e/v6e 128 MiB, v7x 64 MiB) minus headroom."""
    try:
        cap = int(pltpu.get_tpu_info().vmem_capacity_bytes)
    except Exception:  # pragma: no cover - conservative fallback
        cap = 64 * 1024 * 1024
    return max(32 * 1024 * 1024, min(int(cap * 0.8), 100 * 1024 * 1024))


def _choose_batch_tile(B, Tp):
    """Largest divisor of B with <=1024 matmul rows; keep >=2 parallel steps
    on the batch grid axis (v7x megacore) when that doesn't kill amortization."""
    best = 1
    for tb in range(1, B + 1):
        if B % tb == 0 and tb * Tp <= 1024:
            best = tb
    if B // best < 2:
        for tb in range(best - 1, 1, -1):
            if B % tb == 0 and B // tb >= 2:
                best = tb
                break
    return best


# ----------------------------- kernels ---------------------------------------

def _layer_norm(x, g, b, eps=1e-6):
    mean = jnp.mean(x, axis=-1, keepdims=True)
    var = jnp.mean(jnp.square(x - mean), axis=-1, keepdims=True)
    return (x - mean) * jax.lax.rsqrt(var + eps) * g + b


def patch_embed_kernel(x_ref, w_ref, b_ref, o_ref):
    # x: [TM, Kp] bf16, w: [Kp, D] bf16, b: [1, D] f32   (Conv2d k=stride=p).
    acc = jnp.dot(x_ref[...], w_ref[...], preferred_element_type=jnp.float32)
    o_ref[...] = (acc + b_ref[...]).astype(o_ref.dtype)


def fused_vit_kernel(num_heads, t_real, tb,
                     pe_ref, tok_ref,
                     ln1g_ref, ln1b_ref, wqkv_ref, bqkv_ref, wo_ref, bo_ref,
                     ls1_ref, ln2g_ref, ln2b_ref, w1_ref, b1_ref, w2_ref,
                     b2_ref, ls2_ref, fng_ref, fnb_ref,
                     o_ref, xs_ref, mbias_ref):
    """One grid step = (one batch tile of tb samples, one transformer layer).

    grid = (B // tb, depth); the tile's activations live in the f32 VMEM
    scratch `xs_ref` (shape (tb*Tp, D)) across the depth axis; per-layer
    weights arrive via the BlockSpec index_map along the stacked layer axis.
    """
    layer = pl.program_id(1)
    depth = pl.num_programs(1)

    M, D = xs_ref.shape                       # M = tb * Tp (flattened rows)
    Tp = M // tb
    hd = D // num_heads
    scale = 1.0 / (float(hd) ** 0.5)
    mask_needed = t_real < Tp                 # static

    # ---- layer 0: build tokens = [CLS; patches] + pos, zero-padded to Tp ---
    @pl.when(layer == 0)
    def _():
        for s in range(tb):
            # tok_ref: row 0 = cls + pos[0], rows 1..N = pos[1..N], rest = 0.
            xs_ref[s * Tp:(s + 1) * Tp, :] = tok_ref[...]
            xs_ref[s * Tp + 1:s * Tp + t_real, :] = (
                tok_ref[1:t_real, :] + pe_ref[s].astype(jnp.float32))
        if mask_needed:
            kidx = jax.lax.broadcasted_iota(jnp.int32, (1, Tp), 1)
            mbias_ref[...] = jnp.where(kidx < t_real, 0.0, -1e30)

    x = xs_ref[...]                           # (M, D) f32, VMEM-resident

    # ------------------- multi-head self-attention (pre-LN) -----------------
    h = _layer_norm(x, ln1g_ref[0], ln1b_ref[0])
    qkv = (jnp.dot(h.astype(jnp.bfloat16), wqkv_ref[0],
                   preferred_element_type=jnp.float32) + bqkv_ref[0])  # (M,3D)

    mbias = mbias_ref[...] if mask_needed else None      # (1, Tp) additive
    attn_rows = []
    for s in range(tb):                       # static, small batch tile
        r0 = s * Tp
        attn_s = jnp.zeros((Tp, D), jnp.float32)
        for hidx in range(num_heads):         # static lane slices: no relayout
            c0 = hidx * hd
            qh = qkv[r0:r0 + Tp, c0:c0 + hd].astype(jnp.bfloat16)
            kh = qkv[r0:r0 + Tp, D + c0:D + c0 + hd].astype(jnp.bfloat16)
            vh = qkv[r0:r0 + Tp, 2 * D + c0:2 * D + c0 + hd].astype(jnp.bfloat16)
            sc = jax.lax.dot_general(                     # Q @ K^T (NT form)
                qh, kh, (((1,), (1,)), ((), ())),
                preferred_element_type=jnp.float32) * scale
            if mask_needed:
                sc = sc + mbias
            sc = sc - jnp.max(sc, axis=-1, keepdims=True)
            sc = jnp.exp(sc)
            sc = sc * pl.reciprocal(jnp.sum(sc, axis=-1, keepdims=True),
                                    approx=True)
            ch = jnp.dot(sc.astype(jnp.bfloat16), vh,
                         preferred_element_type=jnp.float32)  # (Tp, hd)
            # Fold the head straight through its slice of the output
            # projection; avoids a lane-dim concat of per-head contexts.
            attn_s = attn_s + jnp.dot(ch.astype(jnp.bfloat16),
                                      wo_ref[0, c0:c0 + hd, :],
                                      preferred_element_type=jnp.float32)
        attn_rows.append(attn_s)
    attn = attn_rows[0] if tb == 1 else jnp.concatenate(attn_rows, axis=0)
    x = x + ls1_ref[0] * (attn + bo_ref[0])               # LayerScale residual

    # ------------------------------ MLP (pre-LN) ----------------------------
    h2 = _layer_norm(x, ln2g_ref[0], ln2b_ref[0])
    m = (jnp.dot(h2.astype(jnp.bfloat16), w1_ref[0],
                 preferred_element_type=jnp.float32) + b1_ref[0])
    # TODO(synk): dinov2 uses exact (erf) GELU; tanh approximation used here.
    m = jax.nn.gelu(m, approximate=True)
    m = (jnp.dot(m.astype(jnp.bfloat16), w2_ref[0],
                 preferred_element_type=jnp.float32) + b2_ref[0])
    x = x + ls2_ref[0] * m

    xs_ref[...] = x

    @pl.when(layer == depth - 1)
    def _():
        # final LayerNorm fused into the last layer; cast to bf16 at the store
        y = _layer_norm(x, fng_ref[...], fnb_ref[...])
        o_ref[...] = y.reshape(o_ref.shape).astype(o_ref.dtype)


# ----------------------------- wrappers ---------------------------------------

def patch_embed(patches, w, b, *, tm=512):
    """[M, K] patches x [K, D] (Conv2d k=stride=p as matmul); bf16 output."""
    M, K = patches.shape
    D = w.shape[1]
    Kp = _round_up(K, 128)
    TM = min(tm, _round_up(M, 8))
    Mp = _round_up(M, TM)
    if Mp != M or Kp != K:
        patches = jnp.pad(patches, ((0, Mp - M), (0, Kp - K)))
    if Kp != K:
        w = jnp.pad(w, ((0, Kp - K), (0, 0)))

    out = pl.pallas_call(
        patch_embed_kernel,
        out_shape=jax.ShapeDtypeStruct((Mp, D), jnp.bfloat16),
        grid=(Mp // TM,),
        in_specs=[
            pl.BlockSpec((TM, Kp), lambda i: (i, 0)),
            pl.BlockSpec((Kp, D), lambda i: (0, 0)),
            pl.BlockSpec((1, D), lambda i: (0, 0)),
        ],
        out_specs=pl.BlockSpec((TM, D), lambda i: (i, 0)),
        compiler_params=pltpu.CompilerParams(
            dimension_semantics=("parallel",),
            vmem_limit_bytes=_derive_vmem_limit_bytes()),
    )(patches.astype(jnp.bfloat16), w.astype(jnp.bfloat16), b)
    return out[:M]


def fused_vit_blocks(pe, tok_bias, params, *, num_heads, t_real, tb=None):
    """All transformer blocks + final LayerNorm in a single pallas_call.

    pe:       (B, N, D) bf16 patch embeddings (no CLS token).
    tok_bias: (Tp, D) f32 = [cls + pos[0]; pos[1:T]; zeros]  (token init).
    """
    B, N, D = pe.shape
    Tp = tok_bias.shape[0]
    assert D % num_heads == 0
    blk = params["blk"]
    depth, _, mlp = blk["w1"].shape
    if tb is None:
        tb = _choose_batch_tile(B, Tp)
    assert B % tb == 0

    def wspec(arr):  # per-layer stacked weight: index_map selects layer slice
        nd = arr.ndim
        return pl.BlockSpec((1,) + arr.shape[1:],
                            lambda b, l, _nd=nd: (l,) + (0,) * (_nd - 1))

    def cspec(arr):  # constant parameter (same block every grid step)
        nd = arr.ndim
        return pl.BlockSpec(arr.shape, lambda b, l, _nd=nd: (0,) * _nd)

    weight_names = ["ln1g", "ln1b", "wqkv", "bqkv", "wo", "bo", "ls1",
                    "ln2g", "ln2b", "w1", "b1", "w2", "b2", "ls2"]
    weights = [blk[n] for n in weight_names]

    flops = B * depth * (2 * Tp * D * 3 * D + 4 * Tp * Tp * D
                         + 2 * Tp * D * D + 4 * Tp * D * mlp)
    transcendentals = B * depth * (num_heads * Tp * Tp + Tp * mlp)
    weight_bytes = sum(int(w.size) * w.dtype.itemsize for w in weights)
    bytes_accessed = (B * N * D * 2 + B * Tp * D * 2
                      + (B // tb) * weight_bytes)

    return pl.pallas_call(
        functools.partial(fused_vit_kernel, num_heads, t_real, tb),
        out_shape=jax.ShapeDtypeStruct((B, Tp, D), jnp.bfloat16),
        grid=(B // tb, depth),
        in_specs=([pl.BlockSpec((tb, N, D), lambda b, l: (b, 0, 0)),
                   cspec(tok_bias)]
                  + [wspec(w) for w in weights]
                  + [cspec(params["norm_g"]), cspec(params["norm_b"])]),
        out_specs=pl.BlockSpec((tb, Tp, D), lambda b, l: (b, 0, 0)),
        scratch_shapes=[pltpu.VMEM((tb * Tp, D), jnp.float32),   # activations
                        pltpu.VMEM((1, Tp), jnp.float32)],       # key mask
        compiler_params=pltpu.CompilerParams(
            dimension_semantics=("parallel", "arbitrary"),
            vmem_limit_bytes=_derive_vmem_limit_bytes()),
        cost_estimate=pl.CostEstimate(
            flops=int(flops),
            transcendentals=int(transcendentals),
            bytes_accessed=int(bytes_accessed)),
    )(pe, tok_bias, *weights, params["norm_g"], params["norm_b"])


def simsiam_clip_forward(image, params, *, patch, num_heads):
    """image: [B, C, H, W] (NCHW) -> image_embed: [B, 1 + (H/p)*(W/p), D]."""
    B, C, H, W = image.shape
    Hn, Wn = H // patch, W // patch
    N = Hn * Wn
    D = params["patch_w"].shape[1]
    T = N + 1
    Tp = _round_up(T, 16)          # bf16 packs 16 sublanes per vreg

    # Patchify (glue): identical token / channel ordering to Conv2d k=stride=p.
    patches = image.reshape(B, C, Hn, patch, Wn, patch)
    patches = patches.transpose(0, 2, 4, 1, 3, 5).reshape(B * N, C * patch * patch)
    pe = patch_embed(patches, params["patch_w"], params["patch_b"]).reshape(B, N, D)

    # Token init bias (tiny, batch-independent): row 0 = cls + pos[0],
    # rows 1..N = pos[1..N], rest = 0.  CLS concat / pos add / padding are
    # applied inside the fused kernel at layer == 0 (no [B,T,D] round trip).
    tok_bias = jnp.concatenate(
        [params["cls_token"][0] + params["pos_embed"][0, :1],
         params["pos_embed"][0, 1:T],
         jnp.zeros((Tp - T, D), jnp.float32)], axis=0)

    # All transformer blocks + final LayerNorm fused in one pallas_call.
    x = fused_vit_blocks(pe, tok_bias, params, num_heads=num_heads, t_real=T)

    # VisualEncode's cat(cls_token, patch_tokens) is an identity (CLS already
    # first); just drop the token padding.
    return x[:, :T, :]


# ----------------------------- params ------------------------------------------

def init_params(key, *, C, patch, D, depth, mlp_dim, T):
    keys = jax.random.split(key, 8)
    params = {
        # bf16 matmul weights (MXU operands), f32 biases / norms / scales.
        "patch_w": (jax.random.normal(keys[0], (C * patch * patch, D),
                                      jnp.float32) * 0.02).astype(jnp.bfloat16),
        "patch_b": jnp.zeros((1, D), jnp.float32),
        "cls_token": jax.random.normal(keys[1], (1, 1, D), jnp.float32) * 0.02,
        "pos_embed": jax.random.normal(keys[2], (1, T, D), jnp.float32) * 0.02,
        "norm_g": jnp.ones((1, D), jnp.float32),
        "norm_b": jnp.zeros((1, D), jnp.float32),
    }
    bk = jax.random.split(keys[3], 4)
    params["blk"] = dict(
        ln1g=jnp.ones((depth, 1, D), jnp.float32),
        ln1b=jnp.zeros((depth, 1, D), jnp.float32),
        wqkv=(jax.random.normal(bk[0], (depth, D, 3 * D), jnp.float32)
              * 0.02).astype(jnp.bfloat16),
        bqkv=jnp.zeros((depth, 1, 3 * D), jnp.float32),
        wo=(jax.random.normal(bk[1], (depth, D, D), jnp.float32)
            * 0.02).astype(jnp.bfloat16),
        bo=jnp.zeros((depth, 1, D), jnp.float32),
        ls1=jnp.full((depth, 1, D), 1e-5, jnp.float32),   # LayerScale (dinov2)
        ln2g=jnp.ones((depth, 1, D), jnp.float32),
        ln2b=jnp.zeros((depth, 1, D), jnp.float32),
        w1=(jax.random.normal(bk[2], (depth, D, mlp_dim), jnp.float32)
            * 0.02).astype(jnp.bfloat16),
        b1=jnp.zeros((depth, 1, mlp_dim), jnp.float32),
        w2=(jax.random.normal(bk[3], (depth, mlp_dim, D), jnp.float32)
            * 0.02).astype(jnp.bfloat16),
        b2=jnp.zeros((depth, 1, D), jnp.float32),
        ls2=jnp.full((depth, 1, D), 1e-5, jnp.float32),
    )
    return params


# ----------------------------- main ---------------------------------------------

if __name__ == "__main__":
    # Small ViT-/14-style: 28/14 -> 2x2 = 4 patches + CLS; lane-aligned D=128.
    B, C, H, W = 2, 3, 28, 28
    patch, D, depth, num_heads, mlp_dim = 14, 128, 2, 4, 256
    N = (H // patch) * (W // patch)
    T = N + 1                           # +1 CLS token

    key = jax.random.PRNGKey(0)
    k_img, k_par = jax.random.split(key)
    image = jax.random.normal(k_img, (B, C, H, W), jnp.float32)
    params = init_params(k_par, C=C, patch=patch, D=D, depth=depth,
                         mlp_dim=mlp_dim, T=T)

    out = simsiam_clip_forward(image, params, patch=patch, num_heads=num_heads)
    out = jax.block_until_ready(out)
    assert out.shape == (B, T, D), out.shape
    assert bool(jnp.all(jnp.isfinite(out.astype(jnp.float32))))
    print("KERNEL_OK")
</pallas_src>

<mosaic_0001>
module attributes {stable_mosaic.version = 11 : i64} {
  func.func @patch_embed_kernel(%arg0: i32, %arg1: memref<8x640xbf16, #tpu.memory_space<vmem>>, %arg2: memref<640x128xbf16, #tpu.memory_space<vmem>>, %arg3: memref<1x128xf32, #tpu.memory_space<vmem>>, %arg4: memref<8x128xbf16, #tpu.memory_space<vmem>>) attributes {dimension_semantics = [#tpu.dimension_semantics<parallel>], iteration_bounds = array<i64: 1>, scalar_prefetch = 0 : i64, scratch_operands = 0 : i64, tpu.core_type = #tpu.core_type<tc>, window_params = [{transform_indices = @transform_0, window_bounds = array<i64: 8, 640>}, {pipeline_mode = #tpu.pipeline_mode<synchronous>, transform_indices = @transform_1, window_bounds = array<i64: 640, 128>}, {pipeline_mode = #tpu.pipeline_mode<synchronous>, transform_indices = @transform_2, window_bounds = array<i64: 1, 128>}, {transform_indices = @transform_3, window_bounds = array<i64: 8, 128>}]} {
    %c0 = arith.constant 0 : index
    %c0_0 = arith.constant 0 : index
    %0 = vector.load %arg1[%c0, %c0_0] : memref<8x640xbf16, #tpu.memory_space<vmem>>, vector<8x640xbf16>
    %c0_1 = arith.constant 0 : index
    %c0_2 = arith.constant 0 : index
    %1 = vector.load %arg2[%c0_1, %c0_2] : memref<640x128xbf16, #tpu.memory_space<vmem>>, vector<640x128xbf16>
    %cst = arith.constant dense<0.000000e+00> : vector<8x128xf32>
    %2 = tpu.matmul %0, %1, %cst {dimension_numbers = #tpu.dot_dimension_numbers<[1], [0], [0], [1], [0, 0, 1, 1], [], []>} : vector<8x640xbf16>, vector<640x128xbf16>, vector<8x128xf32> -> vector<8x128xf32>
    %c0_3 = arith.constant 0 : index
    %c0_4 = arith.constant 0 : index
    %3 = vector.load %arg3[%c0_3, %c0_4] : memref<1x128xf32, #tpu.memory_space<vmem>>, vector<1x128xf32>
    %4 = vector.broadcast %3 : vector<1x128xf32> to vector<8x128xf32>
    %5 = arith.addf %2, %4 : vector<8x128xf32>
    %6 = arith.truncf %5 : vector<8x128xf32> to vector<8x128xbf16>
    %c0_5 = arith.constant 0 : index
    %c0_6 = arith.constant 0 : index
    %7 = vector.load %arg4[%c0_5, %c0_6] : memref<8x128xbf16, #tpu.memory_space<vmem>>, vector<8x128xbf16>
    tpu.vector_store %arg4[%c0_5, %c0_6], %6 {strides = array<i32>} : memref<8x128xbf16, #tpu.memory_space<vmem>>, vector<8x128xbf16>,
    return
  }
  func.func @transform_0(%arg0: i32) -> (i32, i32) {
    %c0_i32 = arith.constant 0 : i32
    %c0_i32_0 = arith.constant 0 : i32
    return %arg0, %c0_i32 : i32, i32
  }
  func.func @transform_1(%arg0: i32) -> (i32, i32) {
    %c0_i32 = arith.constant 0 : i32
    %c0_i32_0 = arith.constant 0 : i32
    %c0_i32_1 = arith.constant 0 : i32
    return %c0_i32, %c0_i32_0 : i32, i32
  }
  func.func @transform_2(%arg0: i32) -> (i32, i32) {
    %c0_i32 = arith.constant 0 : i32
    %c0_i32_0 = arith.constant 0 : i32
    %c0_i32_1 = arith.constant 0 : i32
    return %c0_i32, %c0_i32_0 : i32, i32
  }
  func.func @transform_3(%arg0: i32) -> (i32, i32) {
    %c0_i32 = arith.constant 0 : i32
    %c0_i32_0 = arith.constant 0 : i32
    return %arg0, %c0_i32 : i32, i32
  }
}

</mosaic_0001>

<bundles_post_ra>
// kernel: tpu_custom_call.1
= control target key start
LH: loop header
LB: loop body
LE: loop exit
PB: predicated region body
PF: predicated region fallthrough
CT: control target
= control target key end

     0   :  { %8 = vsyncpa [#allocation3], 0  ;;  %s804_s0 = inlined_call_operand.hbm [shape: bf16[8,640], index: 0, kind: input, shape index: {}]   ;;  %s805_s1 = inlined_call_operand.hbm [shape: bf16[640,128], index: 1, kind: input, shape index: {}]   ;;  %s806_s2 = inlined_call_operand.vmem [shape: f32[1,128], index: 2, kind: input, shape index: {}]   ;;  %s807_s3 = inlined_call_operand.hbm [shape: bf16[8,128], index: 3, kind: output, shape index: {}]  }
   0x1   :  { %9 = vsyncpa [#allocation6], 0 }
   0x2   :  { %10 = vsyncpa [#allocation4], 0  ;;  %s765_s12 = smov [#allocation2]   ;;  %s766_s14 = smov [#allocation5]  }
   0x3   :  { %s17_s13 = sshll.u32 %s765_s12, 4  ;;  %s26_s15 = sshll.u32 %s766_s14, 4  ;;  %s18_s13 = int_to_ptr.vmem [resolvable:$true] %s17_s13  ;;  %s27_s15 = int_to_ptr.vmem [resolvable:$true] %s26_s15 }
   0x4   :  { %s707_s16 = scalar_lea.vmem %s18_s13, 320  ;;  %p712_p1 = scmp.lt.s32.totalorder %s18_s13, %s18_s13 }
   0x5   :  { %p708_p0 = scmp.ne.s32.totalorder %s18_s13, %s707_s16  ;;  %p713_p2 = scmp.lt.s32.totalorder %s707_s16, %s707_s16 }
   0x7   :  { %p714_p3 = por %p713_p2, %p712_p1 }
   0x9   :  { %p715_p4 = pnand %p714_p3, %p708_p0 }
   0xb   :  { %718 = shalt.err (!%p715_p4)
}
   0xc   :  { %20 = dma.hbm_to_vmem [thread:$0]  %s804_s0, 320, %s18_s13, [#allocation3]  }
   0xd   :  { %s727_s19 = scalar_lea.vmem %s27_s15, 5120  ;;  %p732_p6 = scmp.lt.s32.totalorder %s27_s15, %s27_s15 }
   0xe   :  { %p728_p5 = scmp.ne.s32.totalorder %s27_s15, %s727_s19  ;;  %p733_p7 = scmp.lt.s32.totalorder %s727_s19, %s727_s19 }
  0x10   :  { %p734_p8 = por %p733_p7, %p732_p6 }
  0x12   :  { %p735_p9 = pnand %p734_p8, %p728_p5 }
  0x14   :  { %738 = shalt.err (!%p735_p9)
}
  0x15   :  { %s767_s20 = smov 64   ;;  %s768_s21 = smov 4  }
  0x16   :  { %32 = dma.hbm_to_vmem [thread:$0]  %s805_s1, 5120, %s27_s15, [#allocation6], %s767_s20, %s767_s20, %s768_s21  }
  0x17   :  { %759 = dma.done.wait [#allocation3], 320  }
  0x18   :  { %760 = vsyncadd [#allocation3], 4294966976 }
  0x19   :  { %761 = dma.done.wait [#allocation6], 5120  }
  0x1a   :  { %762 = vsyncadd [#allocation6], 4294962176  ;;  %v654_v0 = vld [vmem:[#allocation5 + $0x78] sm:$0xff]   ;;  %v658_v4 = vld [vmem:[#allocation5 + $0x70] sm:$0xff]   ;;  %v769_v35 = vmov 0.0   ;;  %vm770_vm0 = vmmov 0  }
  0x1b   :  { %v655_v1 = vld [vmem:[#allocation5 + $0x38] sm:$0xff]   ;;  %574 = vmatprep.subr.bf16.mxu0 %v654_v0  ;;  %v659_v5 = vld [vmem:[#allocation5 + $0x30] sm:$0xff]   ;;  %v662_v8 = vld [vmem:[#allocation5 + $0x68] sm:$0xff]   ;;  %s771_s24 = smov [#allocation7]  }
  0x1c   :  { %v656_v2 = vld [vmem:[#allocation5 + $0xf8] sm:$0xff]   ;;  %575 = vmatpush3.bf16.msra.mxu0 %v655_v1  ;;  %v660_v6 = vld [vmem:[#allocation5 + $0xf0] sm:$0xff]   ;;  %v663_v9 = vld [vmem:[#allocation5 + $0x28] sm:$0xff]   ;;  %s518_s25 = sshll.u32 %s771_s24, 4  ;;  %s519_s25 = int_to_ptr.vmem [resolvable:$true] %s518_s25 }
  0x1d   :  { %v657_v3 = vld [vmem:[#allocation5 + $0xb8] sm:$0xff]   ;;  %596 = vmatprep.subr.bf16.mxu1 %v656_v2  ;;  %576 = vmatprep.subr.bf16.mxu0 %v658_v4  ;;  %v661_v7 = vld [vmem:[#allocation5 + $0xb0] sm:$0xff]   ;;  %v664_v10 = vld [vmem:[#allocation5 + $0xe8] sm:$0xff]   ;;  %s739_s26 = scalar_lea.vmem %s519_s25, 64  ;;  %p744_p11 = scmp.lt.s32.totalorder %s519_s25, %s519_s25 }
  0x1e   :  { %597 = vmatpush3.bf16.msra.mxu1 %v657_v3  ;;  %v665_v11 = vld [vmem:[#allocation5 + $0xa8] sm:$0xff]   ;;  %v666_v12 = vld [vmem:[#allocation5 + $0x60] sm:$0xff]   ;;  %v670_v16 = vld [vmem:[#allocation5 + $0x58] sm:$0xff]   ;;  %p740_p10 = scmp.ne.s32.totalorder %s519_s25, %s739_s26  ;;  %p745_p12 = scmp.lt.s32.totalorder %s739_s26, %s739_s26 }
  0x1f   :  { %598 = vmatprep.subr.bf16.mxu1 %v660_v6  ;;  %v667_v13 = vld [vmem:[#allocation5 + $0x20] sm:$0xff]   ;;  %v671_v17 = vld [vmem:[#allocation5 + $0x18] sm:$0xff]   ;;  %v674_v20 = vld [vmem:[#allocation5 + $0x50] sm:$0xff]  }
  0x20   :  { %577 = vmatpush3.bf16.msra.mxu0 %v659_v5  ;;  %v668_v14 = vld [vmem:[#allocation5 + $0xe0] sm:$0xff]   ;;  %v672_v18 = vld [vmem:[#allocation5 + $0xd8] sm:$0xff]   ;;  %v675_v21 = vld [vmem:[#allocation5 + $0x10] sm:$0xff]   ;;  %p746_p13 = por %p745_p12, %p744_p11 }
  0x21   :  { %578 = vmatprep.subr.bf16.mxu0 %v662_v8  ;;  %v669_v15 = vld [vmem:[#allocation5 + $0xa0] sm:$0xff]   ;;  %v673_v19 = vld [vmem:[#allocation5 + $0x98] sm:$0xff]   ;;  %v676_v22 = vld [vmem:[#allocation5 + $0xd0] sm:$0xff]  }
  0x22   :  { %599 = vmatpush3.bf16.msra.mxu1 %v661_v7  ;;  %v677_v23 = vld [vmem:[#allocation5 + $0x90] sm:$0xff]   ;;  %v678_v24 = vld [vmem:[#allocation5 + $0x48] sm:$0xff]   ;;  %v682_v28 = vld [vmem:[#allocation5 + $0x40] sm:$0xff]   ;;  %p747_p0 = pnand %p746_p13, %p740_p10 }
  0x23   :  { %600 = vmatprep.subr.bf16.mxu1 %v664_v10  ;;  %v679_v25 = vld [vmem:[#allocation5 + $0x8] sm:$0xff]   ;;  %v683_v29 = vld [vmem:[#allocation5] sm:$0xff]   ;;  %v43_v36 = vld [vmem:[#allocation2 + $0x8] sm:$0xff] }
  0x24   :  { %579 = vmatpush3.bf16.msra.mxu0 %v663_v9  ;;  %v680_v26 = vld [vmem:[#allocation5 + $0xc8] sm:$0xff]   ;;  %v684_v30 = vld [vmem:[#allocation5 + $0xc0] sm:$0xff]   ;;  %v531_v37 = vcombine.low %v43_v36, %v43_v36  ;;  %v532_v38 = vcombine.high %v43_v36, %v43_v36  ;;  %v690_v39 = vld [vmem:[#allocation5 + $0x138] sm:$0xff]  }
  0x25   :  { %580 = vmatprep.subr.bf16.mxu0 %v666_v12  ;;  %v681_v27 = vld [vmem:[#allocation5 + $0x88] sm:$0xff]   ;;  %v687_v34 = vld [vmem:[#allocation5 + $0x80] sm:$0xff]   ;;  %v691_v40 = vld [vmem:[#allocation5 + $0x130] sm:$0xff]  }
  0x26   :  { %601 = vmatpush3.bf16.msra.mxu1 %v665_v11  ;;  %v42_v31 = vld [vmem:[#allocation2] sm:$0xff]  ;;  %462 = vmatprep.mubr.bf16.mxu1 %v532_v38  ;;  %v693_v42 = vld [vmem:[#allocation5 + $0x120] sm:$0xff]   ;;  %v694_v43 = vld [vmem:[#allocation5 + $0x118] sm:$0xff]  }
  0x27   :  { %602 = vmatprep.subr.bf16.mxu1 %v668_v14  ;;  %v529_v32 = vcombine.low %v42_v31, %v42_v31  ;;  %v530_v33 = vcombine.high %v42_v31, %v42_v31  ;;  %v692_v41 = vld [vmem:[#allocation5 + $0x128] sm:$0xff]   ;;  %v695_v44 = vld [vmem:[#allocation5 + $0x110] sm:$0xff]   ;;  %v697_v46 = vld [vmem:[#allocation5 + $0x100] sm:$0xff]  }
  0x28   :  { %581 = vmatpush3.bf16.msra.mxu0 %v667_v13  ;;  %v696_v45 = vld [vmem:[#allocation5 + $0x108] sm:$0xff]   ;;  %v698_v47 = vld [vmem:[#allocation2 + $0x10] ss:$0 sps:$4 sm:$0xff]  }
  0x29   :  { %582 = vmatprep.subr.bf16.mxu0 %v670_v16  ;;  %422 = vmatprep.mubr.bf16.mxu0 %v530_v33  ;;  %v528_v57 = vld [vmem:[%s806_s2] ss:$0 sm:$0xff] }
  0x2a   :  { %603 = vmatpush3.bf16.msra.mxu1 %v669_v15 }
  0x2b   :  { %604 = vmatprep.subr.bf16.mxu1 %v672_v18 }
  0x2c   :  { %583 = vmatpush3.bf16.msra.mxu0 %v671_v17 }
  0x2d   :  { %584 = vmatprep.subr.bf16.mxu0 %v674_v20 }
  0x2e   :  { %605 = vmatpush3.bf16.msra.mxu1 %v673_v19 }
  0x2f   :  { %606 = vmatprep.subr.bf16.mxu1 %v676_v22 }
  0x30   :  { %585 = vmatpush3.bf16.msra.mxu0 %v675_v21 }
  0x31   :  { %586 = vmatprep.subr.bf16.mxu0 %v678_v24 }
  0x32   :  { %607 = vmatpush3.bf16.msra.mxu1 %v677_v23 }
  0x33   :  { %608 = vmatprep.subr.bf16.mxu1 %v680_v26 }
  0x34   :  { %587 = vmatpush3.bf16.msra.mxu0 %v679_v25 }
  0x35   :  { %588 = vmatprep.subr.bf16.mxu0 %v682_v28 }
  0x36   :  { %609 = vmatpush3.bf16.msra.mxu1 %v681_v27 }
  0x37   :  { %610 = vmatprep.subr.bf16.mxu1 %v684_v30 }
  0x38   :  { %589 = vmatpush3.bf16.msra.mxu0 %v683_v29 }
  0x39   :  { %627 = vmatprep.subr.bf16.mxu0 %v769_v35 }
  0x3a   :  { %611 = vmatpush3.bf16.msra.mxu1 %v687_v34 }
  0x3b   :  { %423 = vmatmul.mubr.bf16.vlgmr.msra.gmra.mxu0 %v529_v32 }
  0x3c   :  { %628 = vmatpush3.bf16.msra.mxu0 %v690_v39  ;;  %643 = vmatprep.mubr.msk.bf16.mxu0 %vm770_vm0, %v769_v35 }
  0x3d   :  { %463 = vmatmul.mubr.bf16.vlgmr.msra.gmra.mxu1 %v531_v37  ;;  %629 = vmatprep.subr.bf16.mxu0 %v769_v35 }
  0x40   :  { %630 = vmatpush3.bf16.msra.mxu0 %v691_v40 }
  0x41   :  { %631 = vmatprep.subr.bf16.mxu0 %v769_v35 }
  0x44   :  { %632 = vmatpush3.bf16.msra.mxu0 %v692_v41 }
  0x45   :  { %633 = vmatprep.subr.bf16.mxu0 %v769_v35 }
  0x48   :  { %634 = vmatpush3.bf16.msra.mxu0 %v693_v42 }
  0x49   :  { %635 = vmatprep.subr.bf16.mxu0 %v769_v35 }
  0x4c   :  { %636 = vmatpush3.bf16.msra.mxu0 %v694_v43 }
  0x4d   :  { %637 = vmatprep.subr.bf16.mxu0 %v769_v35 }
  0x50   :  { %638 = vmatpush3.bf16.msra.mxu0 %v695_v44 }
  0x51   :  { %639 = vmatprep.subr.bf16.mxu0 %v769_v35 }
  0x54   :  { %640 = vmatpush3.bf16.msra.mxu0 %v696_v45 }
  0x55   :  { %641 = vmatprep.subr.bf16.mxu0 %v769_v35 }
  0x58   :  { %642 = vmatpush3.bf16.msra.mxu0 %v697_v46 }
  0x5b   :  { %644 = vmatmul.mubr.bf16.vlgmr.msra.gmra.mxu0 %v698_v47 }
  0xfb   :  { %v590_v48 = vpop.f32.mrf.mxu0 }
  0xfd   :  { %v591_v49 = vpop.f32.mrf.mxu0  ;;  %v612_v50 = vpop.f32.mrf.mxu1 }
  0xfe   :  { %v592_v56 = vadd.f32 %v591_v49, %v590_v48 }
  0xff   :  { %v593_v51 = vpop.f32.mrf.mxu0  ;;  %v613_v52 = vpop.f32.mrf.mxu1 }
 0x100   :  { %v425_v58 = vadd.f32 %v592_v56, %v528_v57  ;;  %v614_v59 = vadd.f32 %v613_v52, %v612_v50 }
 0x101   :  { %v594_v53 = vpop.f32.mrf.mxu0  ;;  %v615_v54 = vpop.f32.mrf.mxu1 }
 0x102   :  { %v465_v60 = vadd.f32 %v614_v59, %v425_v58 }
 0x103   :  { %v616_v55 = vpop.f32.mrf.mxu1 }
 0x11b   :  { %v504_v61 = vpop.f32.mrf.mxu0 }
 0x11c   :  { %v505_v62 = vadd.f32 %v504_v61, %v465_v60 }
 0x11d   :  { %v645_v63 = vpop.f32.mrf.mxu0 }
 0x11e   :  { %v510_v0 = vpack.c.bf16 %v505_v62, %v505_v62 }
 0x11f   :  { %v507_v1 = vpop.f32.mrf.mxu0 }
 0x120   :  { %511 = vst [vmem:[#allocation7] sm:$0xf] %v510_v0 }
 0x121   :  { %v646_v2 = vpop.f32.mrf.mxu0 }
 0x122   :  { %750 = shalt.err (!%p747_p0)
}
 0x123   :  { %521 = dma.vmem_to_hbm [thread:$0]  %s519_s25, 64, %s807_s3, [#allocation4]  }
 0x124   :  { %763 = dma.done.wait [#allocation4], 64  }
 0x125   :  { %764 = vsyncadd [#allocation4], 4294967232 }
 0x126   :  { %525 = vsyncpa [#allocation3], 1 }
 0x127   :  { %526 = vsyncpa [#allocation6], 1 }
 0x128   :  { %527 = vsyncpa [#allocation4], 1 }

</bundles_post_ra>
